<compile_context>
chip_gen: v7x
topology: tpu7x:2x2x1
jax: 0.10.0
libtpu: 0.0.40
codegen_flags: <defaults>
</compile_context>

<pallas_src>
import math

import jax
import jax.numpy as jnp
from jax.experimental import pallas as pl
from jax.experimental.pallas import tpu as pltpu


LANE = 128
SUBLANE = 8


def _round_up(n, m):
    return ((n + m - 1) // m) * m


def fused_kernel(x_ref, w1_ref, scale_ref, shift_ref, w2_ref, b2_ref, o_ref):
    # Linear1 on the MXU: (tb, din) bf16 @ (din, dh_p) bf16 -> f32 accumulation.
    h = jnp.dot(x_ref[...], w1_ref[...], preferred_element_type=jnp.float32)
    # Eval-mode BatchNorm1d folded to scale/shift, applied in f32 on the VPU:
    #   (h + b1 - mean) * gamma/sqrt(var+eps) + beta == h*scale + shift
    h = h * scale_ref[...] + shift_ref[...]
    # ReLU; Dropout is identity in eval mode.
    h = jnp.maximum(h, 0.0)
    # Linear2 on the MXU; bias add in f32 on the VPU.
    out = jnp.dot(h.astype(jnp.bfloat16), w2_ref[...],
                  preferred_element_type=jnp.float32)
    o_ref[...] = (out + b2_ref[...]).astype(o_ref.dtype)


def prepare_params(params, *, eps=1e-5):
    """One-time param prep (hoisted out of the per-call path).

    Folds eval-mode BatchNorm1d into an f32 (scale, shift) pair, pads the hidden
    dim to a lane multiple, and casts weights to bf16.  x's feature dim and the
    output dim are intentionally left UNPADDED.
    """
    w1, b1 = params["w1"], params["b1"]
    gamma, beta = params["gamma"], params["beta"]
    mean, var = params["running_mean"], params["running_var"]
    w2, b2 = params["w2"], params["b2"]

    input_dim, hidden_dim = w1.shape
    output_dim = w2.shape[1]
    dh_p = _round_up(hidden_dim, LANE)

    # Eval-mode BN: y = (h - mean) / sqrt(var + eps) * gamma + beta
    #             = h * scale + shift   with h = x @ w1 + b1 already including b1,
    # so fold b1 into shift:  shift = (b1 - mean) * scale + beta.
    scale = gamma / jnp.sqrt(var + eps)                       # (hidden,)
    shift = (b1 - mean) * scale + beta                        # (hidden,)

    w1p = jnp.zeros((input_dim, dh_p), jnp.bfloat16).at[:, :hidden_dim].set(
        w1.astype(jnp.bfloat16))
    sclp = jnp.zeros((1, dh_p), jnp.float32).at[0, :hidden_dim].set(scale)
    shfp = jnp.zeros((1, dh_p), jnp.float32).at[0, :hidden_dim].set(shift)
    w2p = jnp.zeros((dh_p, output_dim), jnp.bfloat16).at[:hidden_dim, :].set(
        w2.astype(jnp.bfloat16))
    b2p = b2.astype(jnp.float32).reshape(1, output_dim)

    return {
        "w1": w1p, "scale": sclp, "shift": shfp, "w2": w2p, "b2": b2p,
        "input_dim": input_dim, "hidden_pad": dh_p, "output_dim": output_dim,
    }


def dropout_batchnorm_forward(x, prep, *, max_batch_tile=1024):
    """Eval-mode forward of DropoutBatchNormModel as one fused Pallas kernel.

    x:    (B, input_dim) float32
    prep: output of prepare_params() (constant across calls).
    """
    B, input_dim = x.shape
    assert input_dim == prep["input_dim"]
    dh_p = prep["hidden_pad"]
    output_dim = prep["output_dim"]

    # Batch tile: big (amortizes per-step overhead + resident-weight reuse) but
    # capped at ~ceil(B/2) so the parallel batch axis has >=2 steps when B permits
    # (keeps both v7x TensorCores busy).  Always a multiple of the sublane (8).
    tb = min(max_batch_tile, max(SUBLANE, _round_up(-(-B // 2), SUBLANE)))
    b_p = _round_up(B, tb)

    # Only x is touched per call: bf16 cast (+ batch pad only when needed).
    if b_p != B:
        xb = jnp.zeros((b_p, input_dim), jnp.bfloat16).at[:B].set(
            x.astype(jnp.bfloat16))
    else:
        xb = x.astype(jnp.bfloat16)

    grid = (b_p // tb,)

    cost = pl.CostEstimate(
        flops=2 * b_p * (input_dim * dh_p + dh_p * output_dim),
        transcendentals=0,
        bytes_accessed=(b_p * input_dim * 2            # x (bf16)
                        + input_dim * dh_p * 2         # w1 (bf16)
                        + 2 * dh_p * 4                 # scale + shift (f32)
                        + dh_p * output_dim * 2        # w2 (bf16)
                        + output_dim * 4               # b2 (f32)
                        + b_p * output_dim * 4),       # out (f32, unpadded)
    )

    # VMEM budget: double-buffered x/out tiles + single-buffered resident params.
    vmem_needed = (2 * tb * input_dim * 2 + 2 * tb * output_dim * 4
                   + input_dim * dh_p * 2 + dh_p * output_dim * 2
                   + 2 * dh_p * 4 + output_dim * 4)
    vmem_limit = int(min(max(2 * vmem_needed, 8 << 20), 48 << 20))

    # Constant-index params: single-buffered (no point double-buffering a block
    # whose index never changes; halves their VMEM footprint on v7x).
    resident = lambda shape: pl.BlockSpec(shape, lambda i: (0, 0),
                                          pipeline_mode=pl.Buffered(1))

    out_p = pl.pallas_call(
        fused_kernel,
        out_shape=jax.ShapeDtypeStruct((b_p, output_dim), jnp.float32),
        grid=grid,
        in_specs=[
            pl.BlockSpec((tb, input_dim), lambda i: (i, 0)),  # x tile (pipelined)
            resident((input_dim, dh_p)),                      # w1
            resident((1, dh_p)),                              # BN scale
            resident((1, dh_p)),                              # BN shift (+ b1)
            resident((dh_p, output_dim)),                     # w2
            resident((1, output_dim)),                        # b2
        ],
        out_specs=pl.BlockSpec((tb, output_dim), lambda i: (i, 0)),
        compiler_params=pltpu.CompilerParams(
            dimension_semantics=("parallel",),                # megacore on v7x
            vmem_limit_bytes=vmem_limit),
        cost_estimate=cost,
    )(xb, prep["w1"], prep["scale"], prep["shift"], prep["w2"], prep["b2"])

    return out_p[:B] if b_p != B else out_p


def init_linear(key, in_dim, out_dim):
    """PyTorch-style init; weight stored as (in, out) == PyTorch weight.T."""
    kw, kb = jax.random.split(key)
    bound = 1.0 / math.sqrt(in_dim)
    w = jax.random.uniform(kw, (in_dim, out_dim), jnp.float32, -bound, bound)
    b = jax.random.uniform(kb, (out_dim,), jnp.float32, -bound, bound)
    return w, b


if __name__ == "__main__":
    # Matches the spec's x = torch.randn(3, 10); DropoutBatchNormModel(10, 32, 8).
    batch, input_dim, hidden_dim, output_dim = 3, 10, 32, 8

    root = jax.random.PRNGKey(0)
    kx, k1, k2, kg, kb2, km, kv = jax.random.split(root, 7)

    x = jax.random.normal(kx, (batch, input_dim), jnp.float32)
    w1, b1 = init_linear(k1, input_dim, hidden_dim)
    w2, b2 = init_linear(k2, hidden_dim, output_dim)
    gamma = 1.0 + 0.1 * jax.random.normal(kg, (hidden_dim,), jnp.float32)
    beta = 0.1 * jax.random.normal(kb2, (hidden_dim,), jnp.float32)
    running_mean = 0.1 * jax.random.normal(km, (hidden_dim,), jnp.float32)
    running_var = jax.random.uniform(kv, (hidden_dim,), jnp.float32, 0.5, 1.5)

    params = {"w1": w1, "b1": b1, "gamma": gamma, "beta": beta,
              "running_mean": running_mean, "running_var": running_var,
              "w2": w2, "b2": b2}

    # One-time prep (out of the per-call path), then the per-call fused kernel.
    prep = jax.tree_util.tree_map(jax.block_until_ready, prepare_params(params))
    out = dropout_batchnorm_forward(x, prep)
    out = jax.block_until_ready(out)

    # Plain-JAX f32 reference of the eval-mode PyTorch forward.
    eps = 1e-5
    h = x @ w1 + b1
    h = (h - running_mean) / jnp.sqrt(running_var + eps) * gamma + beta
    h = jnp.maximum(h, 0.0)            # ReLU; Dropout is identity in eval mode
    ref = h @ w2 + b2

    assert out.shape == (batch, output_dim)
    # bf16 matmuls with f32 accumulation -> small numerical difference vs f32 ref.
    assert jnp.allclose(out, ref, atol=5e-2, rtol=5e-2), float(
        jnp.max(jnp.abs(out - ref)))

    print("KERNEL_OK")
</pallas_src>

<mosaic_0001>
module attributes {stable_mosaic.version = 11 : i64} {
  func.func @fused_kernel(%arg0: i32, %arg1: memref<8x10xbf16, #tpu.memory_space<vmem>>, %arg2: memref<10x128xbf16, #tpu.memory_space<vmem>>, %arg3: memref<1x128xf32, #tpu.memory_space<vmem>>, %arg4: memref<1x128xf32, #tpu.memory_space<vmem>>, %arg5: memref<128x8xbf16, #tpu.memory_space<vmem>>, %arg6: memref<1x8xf32, #tpu.memory_space<vmem>>, %arg7: memref<8x8xf32, #tpu.memory_space<vmem>>) attributes {dimension_semantics = [#tpu.dimension_semantics<parallel>], iteration_bounds = array<i64: 1>, scalar_prefetch = 0 : i64, scratch_operands = 0 : i64, tpu.core_type = #tpu.core_type<tc>, window_params = [{transform_indices = @transform_0, window_bounds = array<i64: 8, 10>}, {pipeline_mode = #tpu.pipeline_mode<synchronous>, transform_indices = @transform_1, window_bounds = array<i64: 10, 128>}, {pipeline_mode = #tpu.pipeline_mode<synchronous>, transform_indices = @transform_2, window_bounds = array<i64: 1, 128>}, {pipeline_mode = #tpu.pipeline_mode<synchronous>, transform_indices = @transform_3, window_bounds = array<i64: 1, 128>}, {pipeline_mode = #tpu.pipeline_mode<synchronous>, transform_indices = @transform_4, window_bounds = array<i64: 128, 8>}, {pipeline_mode = #tpu.pipeline_mode<synchronous>, transform_indices = @transform_5, window_bounds = array<i64: 1, 8>}, {transform_indices = @transform_6, window_bounds = array<i64: 8, 8>}]} {
    %c0 = arith.constant 0 : index
    %c0_0 = arith.constant 0 : index
    %0 = vector.load %arg1[%c0, %c0_0] : memref<8x10xbf16, #tpu.memory_space<vmem>>, vector<8x10xbf16>
    %c0_1 = arith.constant 0 : index
    %c0_2 = arith.constant 0 : index
    %1 = vector.load %arg2[%c0_1, %c0_2] : memref<10x128xbf16, #tpu.memory_space<vmem>>, vector<10x128xbf16>
    %cst = arith.constant dense<0.000000e+00> : vector<8x128xf32>
    %2 = tpu.matmul %0, %1, %cst {dimension_numbers = #tpu.dot_dimension_numbers<[1], [0], [0], [1], [0, 0, 1, 1], [], []>} : vector<8x10xbf16>, vector<10x128xbf16>, vector<8x128xf32> -> vector<8x128xf32>
    %c0_3 = arith.constant 0 : index
    %c0_4 = arith.constant 0 : index
    %3 = vector.load %arg3[%c0_3, %c0_4] : memref<1x128xf32, #tpu.memory_space<vmem>>, vector<1x128xf32>
    %4 = vector.broadcast %3 : vector<1x128xf32> to vector<8x128xf32>
    %5 = arith.mulf %2, %4 : vector<8x128xf32>
    %c0_5 = arith.constant 0 : index
    %c0_6 = arith.constant 0 : index
    %6 = vector.load %arg4[%c0_5, %c0_6] : memref<1x128xf32, #tpu.memory_space<vmem>>, vector<1x128xf32>
    %7 = vector.broadcast %6 : vector<1x128xf32> to vector<8x128xf32>
    %8 = arith.addf %5, %7 : vector<8x128xf32>
    %cst_7 = arith.constant 0.000000e+00 : f32
    %9 = vector.broadcast %cst_7 : f32 to vector<8x128xf32>
    %10 = arith.maximumf %8, %9 : vector<8x128xf32>
    %11 = arith.truncf %10 : vector<8x128xf32> to vector<8x128xbf16>
    %c0_8 = arith.constant 0 : index
    %c0_9 = arith.constant 0 : index
    %12 = vector.load %arg5[%c0_8, %c0_9] : memref<128x8xbf16, #tpu.memory_space<vmem>>, vector<128x8xbf16>
    %cst_10 = arith.constant dense<0.000000e+00> : vector<8x8xf32>
    %13 = tpu.matmul %11, %12, %cst_10 {dimension_numbers = #tpu.dot_dimension_numbers<[1], [0], [0], [1], [0, 0, 1, 1], [], []>} : vector<8x128xbf16>, vector<128x8xbf16>, vector<8x8xf32> -> vector<8x8xf32>
    %c0_11 = arith.constant 0 : index
    %c0_12 = arith.constant 0 : index
    %14 = vector.load %arg6[%c0_11, %c0_12] : memref<1x8xf32, #tpu.memory_space<vmem>>, vector<1x8xf32>
    %15 = vector.broadcast %14 : vector<1x8xf32> to vector<8x8xf32>
    %16 = arith.addf %13, %15 : vector<8x8xf32>
    %c0_13 = arith.constant 0 : index
    %c0_14 = arith.constant 0 : index
    %17 = vector.load %arg7[%c0_13, %c0_14] : memref<8x8xf32, #tpu.memory_space<vmem>>, vector<8x8xf32>
    tpu.vector_store %arg7[%c0_13, %c0_14], %16 {strides = array<i32>} : memref<8x8xf32, #tpu.memory_space<vmem>>, vector<8x8xf32>,
    return
  }
  func.func @transform_0(%arg0: i32) -> (i32, i32) {
    %c0_i32 = arith.constant 0 : i32
    %c0_i32_0 = arith.constant 0 : i32
    return %arg0, %c0_i32 : i32, i32
  }
  func.func @transform_1(%arg0: i32) -> (i32, i32) {
    %c0_i32 = arith.constant 0 : i32
    %c0_i32_0 = arith.constant 0 : i32
    %c0_i32_1 = arith.constant 0 : i32
    return %c0_i32, %c0_i32_0 : i32, i32
  }
  func.func @transform_2(%arg0: i32) -> (i32, i32) {
    %c0_i32 = arith.constant 0 : i32
    %c0_i32_0 = arith.constant 0 : i32
    %c0_i32_1 = arith.constant 0 : i32
    return %c0_i32, %c0_i32_0 : i32, i32
  }
  func.func @transform_3(%arg0: i32) -> (i32, i32) {
    %c0_i32 = arith.constant 0 : i32
    %c0_i32_0 = arith.constant 0 : i32
    %c0_i32_1 = arith.constant 0 : i32
    return %c0_i32, %c0_i32_0 : i32, i32
  }
  func.func @transform_4(%arg0: i32) -> (i32, i32) {
    %c0_i32 = arith.constant 0 : i32
    %c0_i32_0 = arith.constant 0 : i32
    %c0_i32_1 = arith.constant 0 : i32
    return %c0_i32, %c0_i32_0 : i32, i32
  }
  func.func @transform_5(%arg0: i32) -> (i32, i32) {
    %c0_i32 = arith.constant 0 : i32
    %c0_i32_0 = arith.constant 0 : i32
    %c0_i32_1 = arith.constant 0 : i32
    return %c0_i32, %c0_i32_0 : i32, i32
  }
  func.func @transform_6(%arg0: i32) -> (i32, i32) {
    %c0_i32 = arith.constant 0 : i32
    %c0_i32_0 = arith.constant 0 : i32
    return %arg0, %c0_i32 : i32, i32
  }
}

</mosaic_0001>

<bundles_post_ra>
// kernel: tpu_custom_call.1
= control target key start
LH: loop header
LB: loop body
LE: loop exit
PB: predicated region body
PF: predicated region fallthrough
CT: control target
= control target key end

     0   :  { %vm37_vm0 = vcmask 1044480   ;;  %v312_v0 = vmov 0.0   ;;  %vm313_vm1 = vmmov 0   ;;  %vm33_vm2 = vcmask 80896   ;;  %s401_s0 = inlined_call_operand.vmem [shape: bf16[8,10], index: 0, kind: input, shape index: {}]   ;;  %s402_s1 = inlined_call_operand.vmem [shape: bf16[10,128], index: 1, kind: input, shape index: {}]   ;;  %s403_s2 = inlined_call_operand.vmem [shape: f32[1,128], index: 2, kind: input, shape index: {}]   ;;  %s404_s3 = inlined_call_operand.vmem [shape: f32[1,128], index: 3, kind: input, shape index: {}]   ;;  %s405_s4 = inlined_call_operand.vmem [shape: bf16[128,8], index: 4, kind: input, shape index: {}]   ;;  %s406_s5 = inlined_call_operand.vmem [shape: f32[1,8], index: 5, kind: input, shape index: {}]   ;;  %s407_s6 = inlined_call_operand.hbm [shape: f32[8,8], index: 6, kind: output, shape index: {}]  }
   0x1   :  { %250 = vmatprep.subr.bf16.mxu0 %v312_v0  ;;  %v279_v1 = vld [vmem:[%s402_s1] sm:$0x1f]   ;;  %256 = vmatprep.subr.bf16.mxu1 %v312_v0  ;;  %v281_v5 = vld [vmem:[%s405_s4 + $0x8] sm:$0xff]   ;;  %v282_v6 = vld [vmem:[%s405_s4 + $0x10] sm:$0xff]  }
   0x2   :  { %252 = vmatprep.mubr.msk.bf16.mxu0 %vm313_vm1, %v312_v0  ;;  %v25_v2 = vld [vmem:[%s401_s0] sm:$0xf]  ;;  %272 = vmatprep.mubr.msk.bf16.mxu1 %vm313_vm1, %v312_v0  ;;  %v39_v4 = vsel %vm37_vm0, %v279_v1, 0 }
   0x3   :  { %v280_v3 = vld [vmem:[%s405_s4] sm:$0xff]   ;;  %251 = vmatpush3.bf16.msra.mxu0 %v39_v4 }
   0x4   :  { %257 = vmatpush3.bf16.msra.mxu1 %v280_v3 }
   0x5   :  { %258 = vmatprep.subr.bf16.mxu1 %v312_v0 }
   0x6   :  { %253 = vmatmul.mubr.msk.bf16.vlgmr.msra.gmra.mrb[0].mxu0 %vm33_vm2, %v25_v2 }
   0x8   :  { %259 = vmatpush3.bf16.msra.mxu1 %v281_v5 }
   0x9   :  { %260 = vmatprep.subr.bf16.mxu1 %v312_v0 }
   0xa   :  { %11 = vsyncpa [#allocation3], 0  ;;  %v283_v7 = vld [vmem:[%s405_s4 + $0x18] sm:$0xff]   ;;  %v284_v8 = vld [vmem:[%s405_s4 + $0x20] sm:$0xff]   ;;  %s314_s20 = smov [#allocation2]   ;;  %vm210_vm3 = vcmask 64512  }
   0xb   :  { %v285_v9 = vld [vmem:[%s405_s4 + $0x28] sm:$0xff]   ;;  %v286_v10 = vld [vmem:[%s405_s4 + $0x30] sm:$0xff]   ;;  %v287_v11 = vld [vmem:[%s405_s4 + $0x38] sm:$0xff]   ;;  %s218_s21 = sshll.u32 %s314_s20, 4  ;;  %s219_s21 = int_to_ptr.vmem [resolvable:$true] %s218_s21 }
   0xc   :  { %261 = vmatpush3.bf16.msra.mxu1 %v282_v6  ;;  %v228_v12 = vld [vmem:[%s403_s2] ss:$0 sm:$0xff]  ;;  %s288_s2 = scalar_lea.vmem %s219_s21, 128  ;;  %p293_p1 = scmp.lt.s32.totalorder %s219_s21, %s219_s21 }
   0xd   :  { %262 = vmatprep.subr.bf16.mxu1 %v312_v0  ;;  %v229_v14 = vld [vmem:[%s404_s3] ss:$0 sm:$0xff]  ;;  %p289_p0 = scmp.ne.s32.totalorder %s219_s21, %s288_s2  ;;  %p294_p2 = scmp.lt.s32.totalorder %s288_s2, %s288_s2 }
   0xe   :  { %v230_v22 = vld [vmem:[%s406_s5] ss:$0 sm:$0xff] }
   0xf   :  { %p295_p3 = por %p294_p2, %p293_p1 }
  0x10   :  { %263 = vmatpush3.bf16.msra.mxu1 %v283_v7 }
  0x11   :  { %264 = vmatprep.subr.bf16.mxu1 %v312_v0  ;;  %p296_p4 = pnand %p295_p3, %p289_p0 }
  0x14   :  { %265 = vmatpush3.bf16.msra.mxu1 %v284_v8 }
  0x15   :  { %266 = vmatprep.subr.bf16.mxu1 %v312_v0 }
  0x18   :  { %267 = vmatpush3.bf16.msra.mxu1 %v285_v9 }
  0x19   :  { %268 = vmatprep.subr.bf16.mxu1 %v312_v0 }
  0x1c   :  { %269 = vmatpush3.bf16.msra.mxu1 %v286_v10 }
  0x1d   :  { %270 = vmatprep.subr.bf16.mxu1 %v312_v0 }
  0x20   :  { %271 = vmatpush3.bf16.msra.mxu1 %v287_v11 }
  0xd9   :  { %v75_v13 = vpop.f32.mrb[0].mxu0 }
  0xda   :  { %v88_v15 = vmul.f32 %v228_v12, %v75_v13  ;;  %v254_v16 = vpop.f32.mrb[1].mxu0 }
  0xdb   :  { %v78_v17 = vpop.f32.mrb[2].mxu0 }
  0xdc   :  { %v96_v18 = vadd.f32 %v229_v14, %v88_v15  ;;  %v255_v19 = vpop.f32.mrb[3].mxu0 }
  0xde   :  { %v97_v20 = vmax.f32 %v96_v18, 0.0 }
  0xe0   :  { %v98_v21 = vpack.c.bf16 %v97_v20, %v97_v20 }
  0xe2   :  { %273 = vmatmul.mubr.bf16.vlgmr.msra.gmra.mrb[0].mxu1 %v98_v21 }
 0x1b5   :  { %v204_v23 = vpop.f32.mrb[0].mxu1 }
 0x1b6   :  { %v205_v24 = vadd.f32 %v230_v22, %v204_v23  ;;  %v274_v25 = vpop.f32.mrb[1].mxu1 }
 0x1b7   :  { %v207_v26 = vpop.f32.mrb[2].mxu1 }
 0x1b8   :  { %v275_v27 = vpop.f32.mrb[3].mxu1  ;;  %211 = vst.msk [vmem:[#allocation2] sm:$0xff] %vm210_vm3, %v205_v24 }
 0x1b9   :  { %299 = shalt.err (!%p296_p4)
}
 0x1ba   :  { %s300_s5 = scalar_lea.hbm %s407_s6, 128 }
 0x1bb   :  { %p301_p5 = scmp.ne.s32.totalorder %s407_s6, %s300_s5  ;;  %p304_p6 = scmp.lt.u32.totalorder %s300_s5, %s407_s6 }
 0x1bd   :  { %p306_p7 = pnand %p304_p6, %p301_p5 }
 0x1bf   :  { %309 = shalt.err (!%p306_p7)
}
 0x1c0   :  { %221 = dma.vmem_to_hbm [thread:$0]  %s219_s21, 128, %s407_s6, [#allocation3]  }
 0x1c1   :  { %310 = dma.done.wait [#allocation3], 128  }
 0x1c2   :  { %311 = vsyncadd [#allocation3], 4294967168 }
 0x1c3   :  { %225 = vsyncpa [#allocation3], 1 }

</bundles_post_ra>
